<compile_context>
chip_gen: v7x
topology: tpu7x:2x2x1
jax: 0.10.0
libtpu: 0.0.40
codegen_flags: <defaults>
</compile_context>

<pallas_src>
import jax
import jax.numpy as jnp
from jax.experimental import pallas as pl
from jax.experimental.pallas import tpu as pltpu

LANES = 128


def _fusion_kernel(w_ref, a_ref, b_ref, o_ref):
    # w_ref is a (2,) f32 SMEM ref (scalar-prefetched): cheapest possible
    # scalar-times-vector broadcast, no XLU lane/sublane traffic.
    w4 = w_ref[0]
    wl = w_ref[1]
    o_ref[...] = (a_ref[...] * w4 + b_ref[...] * wl).astype(o_ref.dtype)


def _round_up(x, m):
    return ((x + m - 1) // m) * m


def weighted_fusion_layer(weight_out4, weight_out_log, out4, out_log,
                          *, max_tile_rows=1024):
    """Pallas wrapper.

    weight_out4 / weight_out_log: learnable scalars (the nn.Parameter values).
    out4 / out_log: same-shaped feature tensors (any rank).
    Returns the fused tensor with the original shape/dtype.
    """
    assert out4.shape == out_log.shape, "inputs must have identical shapes"
    assert out4.dtype == out_log.dtype, "inputs must have identical dtypes"
    orig_shape = out4.shape
    dtype = out4.dtype

    # --- scalar weight math (2 sigmoids + a divide): done once in the wrapper.
    w4 = jax.nn.sigmoid(jnp.asarray(weight_out4, jnp.float32))
    wl = jax.nn.sigmoid(jnp.asarray(weight_out_log, jnp.float32))
    total = w4 + wl
    weights = jnp.stack([w4 / total, wl / total]).astype(jnp.float32)  # (2,)

    # --- lane-dense layout: flatten, pad to a multiple of (tile_rows * 128),
    # reshape to (rows, 128) so every load/store uses all 128 lanes.
    n = out4.size
    rows = pl.cdiv(n, LANES)
    tile_rows = min(max_tile_rows, _round_up(rows, 8))   # (8,128) tiling rule
    padded_rows = _round_up(rows, tile_rows)
    padded_n = padded_rows * LANES

    def to_lane_dense(x):
        flat = x.reshape(-1)
        flat = jnp.pad(flat, (0, padded_n - n))
        return flat.reshape(padded_rows, LANES)

    a2 = to_lane_dense(out4)
    b2 = to_lane_dense(out_log)

    grid = (padded_rows // tile_rows,)

    out2 = pl.pallas_call(
        _fusion_kernel,
        out_shape=jax.ShapeDtypeStruct((padded_rows, LANES), dtype),
        grid_spec=pltpu.PrefetchScalarGridSpec(
            num_scalar_prefetch=1,                       # weights -> SMEM
            grid=grid,
            in_specs=[
                pl.BlockSpec((tile_rows, LANES), lambda i, w: (i, 0)),  # out4
                pl.BlockSpec((tile_rows, LANES), lambda i, w: (i, 0)),  # out_log
            ],
            out_specs=pl.BlockSpec((tile_rows, LANES), lambda i, w: (i, 0)),
        ),
        compiler_params=pltpu.CompilerParams(
            # purely data-parallel elementwise fusion: let v7x shard the grid
            # across both TensorCores.
            dimension_semantics=("parallel",),
        ),
    )(weights, a2, b2)

    return out2.reshape(-1)[:n].reshape(orig_shape)


def _reference(weight_out4, weight_out_log, out4, out_log):
    w4 = jax.nn.sigmoid(weight_out4)
    wl = jax.nn.sigmoid(weight_out_log)
    total = w4 + wl
    return (w4 / total) * out4 + (wl / total) * out_log


if __name__ == "__main__":
    key = jax.random.PRNGKey(0)
    k1, k2 = jax.random.split(key)

    # small feature-map shapes consistent with a fusion of two branches
    B, C, H, W = 2, 4, 16, 16
    out4 = jax.random.normal(k1, (B, C, H, W), dtype=jnp.float32)
    out_log = jax.random.normal(k2, (B, C, H, W), dtype=jnp.float32)

    # nn.Parameter(torch.tensor(0.5)) for both weights
    weight_out4 = jnp.float32(0.5)
    weight_out_log = jnp.float32(0.5)

    out = weighted_fusion_layer(weight_out4, weight_out_log, out4, out_log)
    out = jax.block_until_ready(out)

    ref = _reference(weight_out4, weight_out_log, out4, out_log)
    assert out.shape == ref.shape and out.dtype == ref.dtype
    assert jnp.allclose(out, ref, atol=1e-6, rtol=1e-6)

    print("KERNEL_OK")
</pallas_src>

<mosaic_0001>
module attributes {stable_mosaic.version = 11 : i64} {
  func.func @_fusion_kernel(%arg0: i32, %arg1: memref<2xf32, #tpu.memory_space<smem>>, %arg2: memref<16x128xf32, #tpu.memory_space<vmem>>, %arg3: memref<16x128xf32, #tpu.memory_space<vmem>>, %arg4: memref<16x128xf32, #tpu.memory_space<vmem>>) attributes {dimension_semantics = [#tpu.dimension_semantics<parallel>], iteration_bounds = array<i64: 1>, scalar_prefetch = 1 : i64, scratch_operands = 0 : i64, tpu.core_type = #tpu.core_type<tc>, window_params = [{transform_indices = @transform_0, window_bounds = array<i64: 16, 128>}, {transform_indices = @transform_1, window_bounds = array<i64: 16, 128>}, {transform_indices = @transform_2, window_bounds = array<i64: 16, 128>}]} {
    %c0 = arith.constant 0 : index
    %0 = memref.load %arg1[%c0] : memref<2xf32, #tpu.memory_space<smem>>
    %c1 = arith.constant 1 : index
    %1 = memref.load %arg1[%c1] : memref<2xf32, #tpu.memory_space<smem>>
    %c0_0 = arith.constant 0 : index
    %c0_1 = arith.constant 0 : index
    %2 = vector.load %arg2[%c0_0, %c0_1] : memref<16x128xf32, #tpu.memory_space<vmem>>, vector<16x128xf32>
    %3 = vector.broadcast %0 : f32 to vector<16x128xf32>
    %4 = arith.mulf %2, %3 : vector<16x128xf32>
    %c0_2 = arith.constant 0 : index
    %c0_3 = arith.constant 0 : index
    %5 = vector.load %arg3[%c0_2, %c0_3] : memref<16x128xf32, #tpu.memory_space<vmem>>, vector<16x128xf32>
    %6 = vector.broadcast %1 : f32 to vector<16x128xf32>
    %7 = arith.mulf %5, %6 : vector<16x128xf32>
    %8 = arith.addf %4, %7 : vector<16x128xf32>
    %c0_4 = arith.constant 0 : index
    %c0_5 = arith.constant 0 : index
    %9 = vector.load %arg4[%c0_4, %c0_5] : memref<16x128xf32, #tpu.memory_space<vmem>>, vector<16x128xf32>
    tpu.vector_store %arg4[%c0_4, %c0_5], %8 {strides = array<i32>} : memref<16x128xf32, #tpu.memory_space<vmem>>, vector<16x128xf32>,
    return
  }
  func.func @transform_0(%arg0: i32, %arg1: memref<2xf32, #tpu.memory_space<smem>>) -> (i32, i32) {
    %c0_i32 = arith.constant 0 : i32
    %c0_i32_0 = arith.constant 0 : i32
    return %arg0, %c0_i32 : i32, i32
  }
  func.func @transform_1(%arg0: i32, %arg1: memref<2xf32, #tpu.memory_space<smem>>) -> (i32, i32) {
    %c0_i32 = arith.constant 0 : i32
    %c0_i32_0 = arith.constant 0 : i32
    return %arg0, %c0_i32 : i32, i32
  }
  func.func @transform_2(%arg0: i32, %arg1: memref<2xf32, #tpu.memory_space<smem>>) -> (i32, i32) {
    %c0_i32 = arith.constant 0 : i32
    %c0_i32_0 = arith.constant 0 : i32
    return %arg0, %c0_i32 : i32, i32
  }
}

</mosaic_0001>

<bundles_post_ra>
// kernel: tpu_custom_call.1
= control target key start
LH: loop header
LB: loop body
LE: loop exit
PB: predicated region body
PF: predicated region fallthrough
CT: control target
= control target key end

     0   :  { %s253_s0 = inlined_call_operand.hbm [shape: f32[2], index: 0, kind: input, shape index: {}]   ;;  %s254_s1 = inlined_call_operand.hbm [shape: f32[16,128], index: 1, kind: input, shape index: {}]   ;;  %s255_s2 = inlined_call_operand.hbm [shape: f32[16,128], index: 2, kind: input, shape index: {}]   ;;  %s256_s3 = inlined_call_operand.hbm [shape: f32[16,128], index: 3, kind: output, shape index: {}]  }
   0x1   :  { %s86_s14 = scalar_lea.hbm %s253_s0, 16 }
   0x2   :  { %p87_p0 = scmp.ne.s32.totalorder %s253_s0, %s86_s14  ;;  %p90_p1 = scmp.lt.u32.totalorder %s86_s14, %s253_s0 }
   0x4   :  { %p92_p2 = pnand %p90_p1, %p87_p0 }
   0x6   :  { %95 = shalt.err (!%p92_p2)  }
   0x7   :  { %s170_s19 = smov [#allocation3]  }
   0x8   :  { %9 = dma.hbm_to_smem %s253_s0, 16, %s170_s19, [#allocation2] }
   0x9   :  { %162 = dma.done.wait [#allocation2], 16 }
   0xa   :  { %163 = vsyncadd [#allocation2], 4294967280 }
   0xb   :  { %11 = sfence }
   0xc   :  { %12 = vsyncpa [#allocation5], 0 }
   0xd   :  { %13 = vsyncpa [#allocation8], 0 }
   0xe   :  { %14 = vsyncpa [#allocation6], 0  ;;  %s171_s22 = smov [#allocation4]   ;;  %s96_s26 = scalar_lea.hbm %s254_s1, 256 }
   0xf   :  { %s20_s23 = sshll.u32 %s171_s22, 4  ;;  %p97_p3 = scmp.ne.s32.totalorder %s254_s1, %s96_s26  ;;  %s21_s23 = int_to_ptr.vmem [resolvable:$true] %s20_s23 }
  0x10   :  { %p100_p4 = scmp.lt.u32.totalorder %s96_s26, %s254_s1 }
  0x12   :  { %p102_p5 = pnand %p100_p4, %p97_p3 }
  0x14   :  { %105 = shalt.err (!%p102_p5)
}
  0x15   :  { %s106_s0 = scalar_lea.vmem %s21_s23, 256  ;;  %p111_p7 = scmp.lt.s32.totalorder %s21_s23, %s21_s23 }
  0x16   :  { %p107_p6 = scmp.ne.s32.totalorder %s21_s23, %s106_s0  ;;  %p112_p8 = scmp.lt.s32.totalorder %s106_s0, %s106_s0 }
  0x18   :  { %p113_p9 = por %p112_p8, %p111_p7 }
  0x1a   :  { %p114_p10 = pnand %p113_p9, %p107_p6 }
  0x1c   :  { %117 = shalt.err (!%p114_p10)
}
  0x1d   :  { %s172_s4 = smov 128   ;;  %s173_s5 = smov 8  }
  0x1e   :  { %26 = dma.hbm_to_vmem [thread:$0]  %s254_s1, 256, %s21_s23, [#allocation5], %s172_s4, %s172_s4, %s173_s5  }
  0x1f   :  { %s174_s8 = smov [#allocation7]   ;;  %s118_s12 = scalar_lea.hbm %s255_s2, 256 }
  0x20   :  { %s32_s9 = sshll.u32 %s174_s8, 4  ;;  %p119_p11 = scmp.ne.s32.totalorder %s255_s2, %s118_s12  ;;  %s33_s9 = int_to_ptr.vmem [resolvable:$true] %s32_s9 }
  0x21   :  { %p122_p12 = scmp.lt.u32.totalorder %s118_s12, %s255_s2 }
  0x23   :  { %p124_p13 = pnand %p122_p12, %p119_p11 }
  0x25   :  { %127 = shalt.err (!%p124_p13)
}
  0x26   :  { %s128_s17 = scalar_lea.vmem %s33_s9, 256  ;;  %p133_p1 = scmp.lt.s32.totalorder %s33_s9, %s33_s9 }
  0x27   :  { %p129_p0 = scmp.ne.s32.totalorder %s33_s9, %s128_s17  ;;  %p134_p2 = scmp.lt.s32.totalorder %s128_s17, %s128_s17 }
  0x29   :  { %p135_p3 = por %p134_p2, %p133_p1 }
  0x2b   :  { %p136_p4 = pnand %p135_p3, %p129_p0 }
  0x2d   :  { %139 = shalt.err (!%p136_p4)
}
  0x2e   :  { %38 = dma.hbm_to_vmem [thread:$0]  %s255_s2, 256, %s33_s9, [#allocation8], %s172_s4, %s172_s4, %s173_s5  }
  0x2f   :  { %164 = dma.done.wait [#allocation5], 256  }
  0x30   :  { %165 = vsyncadd [#allocation5], 4294967040 }
  0x31   :  { %166 = dma.done.wait [#allocation8], 256  }
  0x32   :  { %167 = vsyncadd [#allocation8], 4294967040  ;;  %s45_s19 = sld [smem:[#allocation3]]  ;;  %s79_s20 = sld [smem:[#allocation3 + $0x1]]  ;;  %v47_v0 = vld [vmem:[#allocation4] sm:$0xff]  ;;  %v52_v2 = vld [vmem:[#allocation7] sm:$0xff] }
  0x33   :  { %v48_v4 = vld [vmem:[#allocation4 + $0x8] sm:$0xff]  ;;  %v53_v8 = vld [vmem:[#allocation7 + $0x8] sm:$0xff]  ;;  %s175_s21 = smov [#allocation9]  }
  0x34   :  { %s66_s22 = sshll.u32 %s175_s21, 4  ;;  %s67_s22 = int_to_ptr.vmem [resolvable:$true] %s66_s22 }
  0x35   :  { %s140_s2 = scalar_lea.vmem %s67_s22, 256  ;;  %p145_p6 = scmp.lt.s32.totalorder %s67_s22, %s67_s22 }
  0x36   :  { %p141_p5 = scmp.ne.s32.totalorder %s67_s22, %s140_s2  ;;  %p146_p7 = scmp.lt.s32.totalorder %s140_s2, %s140_s2 }
  0x38   :  { %v49_v1 = vstv %s45_s19  ;;  %v54_v3 = vstv %s79_s20  ;;  %p147_p8 = por %p146_p7, %p145_p6 }
  0x39   :  { %v50_v5 = vmul.f32 %v49_v1, %v47_v0  ;;  %v55_v6 = vmul.f32 %v54_v3, %v52_v2  ;;  %v51_v7 = vmul.f32 %v49_v1, %v48_v4  ;;  %v56_v9 = vmul.f32 %v54_v3, %v53_v8 }
  0x3a   :  { %p148_p9 = pnand %p147_p8, %p141_p5 }
  0x3b   :  { %v57_v10 = vadd.f32 %v55_v6, %v50_v5  ;;  %v58_v11 = vadd.f32 %v56_v9, %v51_v7 }
  0x3d   :  { %59 = vst [vmem:[#allocation9] sm:$0xff] %v57_v10  ;;  %60 = vst [vmem:[#allocation9 + $0x8] sm:$0xff] %v58_v11 }
  0x3e   :  { %151 = shalt.err (!%p148_p9)
}
  0x3f   :  { %s152_s25 = scalar_lea.hbm %s256_s3, 256 }
  0x40   :  { %p153_p10 = scmp.ne.s32.totalorder %s256_s3, %s152_s25  ;;  %p156_p11 = scmp.lt.u32.totalorder %s152_s25, %s256_s3 }
  0x42   :  { %p158_p12 = pnand %p156_p11, %p153_p10 }
  0x44   :  { %161 = shalt.err (!%p158_p12)
}
  0x45   :  { %72 = dma.vmem_to_hbm [thread:$0]  %s67_s22, 256, %s256_s3, [#allocation6], %s172_s4, %s172_s4, %s173_s5  }
  0x46   :  { %168 = dma.done.wait [#allocation6], 256  }
  0x47   :  { %169 = vsyncadd [#allocation6], 4294967040 }
  0x48   :  { %76 = vsyncpa [#allocation5], 1 }
  0x49   :  { %77 = vsyncpa [#allocation8], 1 }
  0x4a   :  { %78 = vsyncpa [#allocation6], 1 }

</bundles_post_ra>
